<compile_context>
chip_gen: v5e
topology: v5e:2x2
jax: 0.10.0
libtpu: 0.0.40
codegen_flags: <defaults>
</compile_context>

<pallas_src>
import functools

import jax
import jax.numpy as jnp
import numpy as np
from jax.experimental import pallas as pl
from jax.experimental.pallas import tpu as pltpu


def _dynamic_conv_kernel(x_ref, wlin_ref, e_ref, o_ref, acc_ref, *,
                         T, Bb, C, H, K, P, weight_softmax):
    """One batch chunk.

    x_ref    : (T, Bb, C)   input tile, native TBC layout (no wrapper transpose)
    wlin_ref : (C, Npad)    bf16 filter-prediction weights, tap-major columns
    e_ref    : (H, C)       bf16 one-hot head->channel expansion matrix
    o_ref    : (T, Bb, C)   output tile
    acc_ref  : (T*Bb, C)    f32 VMEM accumulator scratch
    """
    M = T * Bb
    x3 = x_ref[...]                              # (T, Bb, C)
    x2 = x3.reshape(M, C)                        # rows ordered (t, b); Bb%8==0 keeps layout
    # bf16 copy only for the MXU; the FMA operand stays in the input dtype
    # (f32 on the tested path, bf16 if the caller feeds bf16).
    x_mm = x2.astype(jnp.bfloat16)
    fma_dt = jnp.bfloat16 if x2.dtype == jnp.bfloat16 else jnp.float32
    x_fma = x2.astype(fma_dt)

    # ---- filter prediction on the MXU (bf16 in, f32 accumulate) ------------
    logits = jnp.dot(x_mm, wlin_ref[...],
                     preferred_element_type=jnp.float32)           # (M, Npad)

    # ---- softmax statistics over the K taps; only m and inv stay live ------
    if weight_softmax:
        m = logits[:, 0:H]
        for k in range(1, K):
            m = jnp.maximum(m, logits[:, k * H:(k + 1) * H])
        denom = jnp.zeros((M, H), jnp.float32)
        for k in range(K):
            denom = denom + jnp.exp(logits[:, k * H:(k + 1) * H] - m)
        inv = pl.reciprocal(denom, approx=True)                    # EUP slot
    else:
        m = inv = None

    e_mat = e_ref[...]                                             # (H, C) bf16

    # ---- dynamic conv: out[t] += w[t, k] * x[t + k - P] --------------------
    acc_ref[...] = jnp.zeros_like(acc_ref)
    for k in range(K):                      # K small & static -> unrolled
        d = k - P                           # time shift of this tap
        if d >= 0:                          # reads x[t + d]; valid t in [0, T-d)
            r0, r1, s0 = 0, M - d * Bb, d * Bb
        else:                               # reads x[t + d]; valid t in [-d, T)
            r0, r1, s0 = (-d) * Bb, M, 0
        rows = r1 - r0                      # multiple of 8*... (Bb-aligned)
        if rows <= 0:
            continue                        # tap lies entirely in the zero padding
        tap = logits[r0:r1, k * H:(k + 1) * H]                     # (rows, H)
        if weight_softmax:
            prob = jnp.exp(tap - m[r0:r1]) * inv[r0:r1]            # recomputed (EUP)
        else:
            prob = tap
        # head -> channel expansion on the MXU via tiny one-hot RHS (bf16 in).
        w_rep = jnp.dot(prob.astype(jnp.bfloat16), e_mat,
                        preferred_element_type=jnp.float32)        # (rows, C)
        xs = x_fma[s0:s0 + rows, :]                                # static slice
        acc_ref[r0:r1, :] += w_rep.astype(fma_dt) * xs

    o_ref[...] = acc_ref[...].reshape(T, Bb, C).astype(o_ref.dtype)


def _vmem_capacity_bytes():
    """Per-core VMEM capacity; falls back to 128 MiB if the query fails."""
    try:
        info = pltpu.get_tpu_info()
        cap = getattr(info, "vmem_capacity_bytes", None)
        if cap:
            return int(cap)
    except Exception:
        pass
    return 128 * 1024 * 1024


def _pick_batch_block(Bp, T, C, n_pad, in_bytes, out_bytes, budget_bytes):
    """Largest Bb (multiple of 8, divides Bp) whose in-kernel footprint fits
    `budget_bytes`; prefers >= 8 (else >= 2) grid steps for pipelining and
    megacore sharding."""
    def footprint(bb):
        m = T * bb
        return (2 * m * C * in_bytes        # double-buffered input block
                + 2 * m * C * out_bytes     # double-buffered output block
                + 3 * m * C * 4             # x_fma / acc / w_rep (f32)
                + m * n_pad * 4)            # predicted-filter logits (f32)

    candidates = [bb for bb in range(8, Bp + 1, 8) if Bp % bb == 0]
    fitting = [bb for bb in candidates if footprint(bb) <= budget_bytes]
    if not fitting:
        # TODO(synk): T-tiling with a K-1 halo would be needed for huge T*C.
        return 8
    for min_steps in (8, 2):
        ok = [bb for bb in fitting if Bp // bb >= min_steps]
        if ok:
            return max(ok)
    return max(fitting)


def dynamic_conv1d_tbc(x_tbc, w_lin, *, kernel_size, padding_l, num_heads,
                       weight_softmax=True):
    """Forward pass of DynamicConv1dTBC (expanded path, eval mode).

    x_tbc : (T, B, C)  timesteps x batch x channels
    w_lin : (H*K, C)   torch nn.Linear weight of weight_linear (no bias)
    """
    T, B, C = x_tbc.shape
    K, H, P = kernel_size, num_heads, padding_l
    assert C % H == 0
    R = C // H
    assert not (K > T and P == K - 1), "K>T special case not needed here"

    # Tap-major, lane-padded, bf16 weight matrix: column n = k*H + h holds the
    # Linear row h*K + k.  (Tiny (H*K, C) tensor — negligible wrapper cost.)
    n_real = H * K
    n_pad = ((n_real + 127) // 128) * 128
    w3 = w_lin.reshape(H, K, C)
    wlin_t = jnp.transpose(w3, (2, 1, 0)).reshape(C, K * H)          # (C, H*K)
    wlin_t = jnp.pad(wlin_t, ((0, 0), (0, n_pad - n_real))).astype(jnp.bfloat16)

    # One-hot head -> channel expansion E[h, h*R:(h+1)*R] = 1 (bf16 exact).
    e_mat = (jnp.arange(C)[None, :] // R
             == jnp.arange(H)[:, None]).astype(jnp.bfloat16)         # (H, C)

    # Pad batch to a multiple of 8 sublanes so the (T,Bb,C)->(T*Bb,C) reshape
    # and the per-tap Bb-row shifts are layout-free (padded rows are zeros and
    # are stripped from the result).
    Bp = ((B + 7) // 8) * 8
    x_in = x_tbc if Bp == B else jnp.pad(x_tbc, ((0, 0), (0, Bp - B), (0, 0)))

    in_bytes = x_in.dtype.itemsize
    cap = _vmem_capacity_bytes()
    if cap <= 96 * 1024 * 1024:            # v7x-class core: 64 MiB VMEM
        budget, vmem_limit = 40 * 1024 * 1024, 48 * 1024 * 1024
    else:                                  # v5e / v6e: 128 MiB VMEM
        budget, vmem_limit = 56 * 1024 * 1024, 64 * 1024 * 1024
    Bb = _pick_batch_block(Bp, T, C, n_pad, in_bytes, in_bytes, budget)
    grid = (Bp // Bb,)

    kernel = functools.partial(
        _dynamic_conv_kernel, T=T, Bb=Bb, C=C, H=H, K=K, P=P,
        weight_softmax=weight_softmax)

    # Note: for realistic configs C is a multiple of 128 so the output block is
    # lane-dense; we deliberately do NOT pad C (extra HBM traffic on a
    # memory-bound op).  The two weight operands are tiny and resident
    # (constant block index), so double-buffering them costs little VMEM.
    out = pl.pallas_call(
        kernel,
        out_shape=jax.ShapeDtypeStruct((T, Bp, C), x_tbc.dtype),
        grid=grid,
        in_specs=[
            pl.BlockSpec((T, Bb, C), lambda b: (0, b, 0)),   # native TBC tile
            pl.BlockSpec((C, n_pad), lambda b: (0, 0)),      # resident weights
            pl.BlockSpec((H, C), lambda b: (0, 0)),          # resident expansion
        ],
        out_specs=pl.BlockSpec((T, Bb, C), lambda b: (0, b, 0)),
        scratch_shapes=[pltpu.VMEM((T * Bb, C), jnp.float32)],
        compiler_params=pltpu.CompilerParams(
            dimension_semantics=("parallel",),
            vmem_limit_bytes=vmem_limit),
    )(x_in, wlin_t, e_mat)
    return out if Bp == B else out[:, :B, :]


def dynamic_conv1d_tbc_ref(x_tbc, w_lin, *, kernel_size, padding_l, num_heads,
                           weight_softmax=True):
    """Pure-JAX reference mirroring DynamicConv1dTBC._forward_expanded."""
    T, B, C = x_tbc.shape
    K, H, P = kernel_size, num_heads, padding_l
    R = C // H
    logits = jnp.einsum("tbc,fc->tbf", x_tbc, w_lin)         # (T, B, H*K)
    w = logits.reshape(T, B, H, K)
    if weight_softmax:
        w = jax.nn.softmax(w, axis=-1)
    xp = jnp.pad(x_tbc, ((P, K - 1 - P), (0, 0), (0, 0)))
    out = jnp.zeros((T, B, C), x_tbc.dtype)
    for k in range(K):
        xs = xp[k:k + T]                                      # X[t + k - P]
        wk = jnp.repeat(w[:, :, :, k], R, axis=2)             # (T, B, C)
        out = out + wk * xs
    return out


if __name__ == "__main__":
    # Small config consistent with the module's TBC convention.
    T, B, C = 8, 2, 32
    H, K = 4, 3
    P = K // 2                       # "same"-style left padding
    WEIGHT_SOFTMAX = True

    key = jax.random.PRNGKey(0)
    kx, kw = jax.random.split(key)

    x = jax.random.normal(kx, (T, B, C), dtype=jnp.float32)

    # Deterministic xavier_uniform init of weight_linear.weight: (H*K, C)
    fan_in, fan_out = C, H * K
    bound = float(np.sqrt(6.0 / (fan_in + fan_out)))
    w_lin = jax.random.uniform(kw, (H * K, C), dtype=jnp.float32,
                               minval=-bound, maxval=bound)

    out = dynamic_conv1d_tbc(x, w_lin, kernel_size=K, padding_l=P,
                             num_heads=H, weight_softmax=WEIGHT_SOFTMAX)
    out = jax.block_until_ready(out)

    ref = dynamic_conv1d_tbc_ref(x, w_lin, kernel_size=K, padding_l=P,
                                 num_heads=H, weight_softmax=WEIGHT_SOFTMAX)
    # bf16 MXU operands -> slightly looser tolerance than the pure-f32 path.
    np.testing.assert_allclose(np.asarray(out), np.asarray(ref),
                               rtol=5e-2, atol=3e-2)
    print("KERNEL_OK")
</pallas_src>

<mosaic_0001>
module attributes {stable_mosaic.version = 11 : i64} {
  func.func @_dynamic_conv_kernel(%arg0: i32, %arg1: memref<8x8x32xf32, #tpu.memory_space<vmem>>, %arg2: memref<32x128xbf16, #tpu.memory_space<vmem>>, %arg3: memref<4x32xbf16, #tpu.memory_space<vmem>>, %arg4: memref<8x8x32xf32, #tpu.memory_space<vmem>>, %arg5: memref<64x32xf32, #tpu.memory_space<vmem>>) attributes {dimension_semantics = [#tpu.dimension_semantics<parallel>], iteration_bounds = array<i64: 1>, scalar_prefetch = 0 : i64, scratch_operands = 1 : i64, tpu.core_type = #tpu.core_type<tc>, window_params = [{transform_indices = @transform_0, window_bounds = array<i64: 8, 8, 32>}, {pipeline_mode = #tpu.pipeline_mode<synchronous>, transform_indices = @transform_1, window_bounds = array<i64: 32, 128>}, {pipeline_mode = #tpu.pipeline_mode<synchronous>, transform_indices = @transform_2, window_bounds = array<i64: 4, 32>}, {transform_indices = @transform_3, window_bounds = array<i64: 8, 8, 32>}]} {
    %c0 = arith.constant 0 : index
    %c0_0 = arith.constant 0 : index
    %c0_1 = arith.constant 0 : index
    %0 = vector.load %arg1[%c0, %c0_0, %c0_1] : memref<8x8x32xf32, #tpu.memory_space<vmem>>, vector<8x8x32xf32>
    %1 = vector.shape_cast %0 : vector<8x8x32xf32> to vector<64x32xf32>
    %2 = arith.truncf %1 : vector<64x32xf32> to vector<64x32xbf16>
    %c0_2 = arith.constant 0 : index
    %c0_3 = arith.constant 0 : index
    %3 = vector.load %arg2[%c0_2, %c0_3] : memref<32x128xbf16, #tpu.memory_space<vmem>>, vector<32x128xbf16>
    %cst = arith.constant dense<0.000000e+00> : vector<64x128xf32>
    %4 = tpu.matmul %2, %3, %cst {dimension_numbers = #tpu.dot_dimension_numbers<[1], [0], [0], [1], [0, 0, 1, 1], [], []>} : vector<64x32xbf16>, vector<32x128xbf16>, vector<64x128xf32> -> vector<64x128xf32>
    %5 = vector.extract_strided_slice %4 {offsets = [0, 0], sizes = [64, 4], strides = [1, 1]} : vector<64x128xf32> to vector<64x4xf32>
    %6 = vector.extract_strided_slice %4 {offsets = [0, 4], sizes = [64, 4], strides = [1, 1]} : vector<64x128xf32> to vector<64x4xf32>
    %7 = arith.maximumf %5, %6 : vector<64x4xf32>
    %8 = vector.extract_strided_slice %4 {offsets = [0, 8], sizes = [64, 4], strides = [1, 1]} : vector<64x128xf32> to vector<64x4xf32>
    %9 = arith.maximumf %7, %8 : vector<64x4xf32>
    %cst_4 = arith.constant 0.000000e+00 : f32
    %10 = vector.broadcast %cst_4 : f32 to vector<64x4xf32>
    %11 = vector.extract_strided_slice %4 {offsets = [0, 0], sizes = [64, 4], strides = [1, 1]} : vector<64x128xf32> to vector<64x4xf32>
    %12 = arith.subf %11, %9 : vector<64x4xf32>
    %13 = math.exp %12 : vector<64x4xf32>
    %14 = arith.addf %10, %13 : vector<64x4xf32>
    %15 = vector.extract_strided_slice %4 {offsets = [0, 4], sizes = [64, 4], strides = [1, 1]} : vector<64x128xf32> to vector<64x4xf32>
    %16 = arith.subf %15, %9 : vector<64x4xf32>
    %17 = math.exp %16 : vector<64x4xf32>
    %18 = arith.addf %14, %17 : vector<64x4xf32>
    %19 = vector.extract_strided_slice %4 {offsets = [0, 8], sizes = [64, 4], strides = [1, 1]} : vector<64x128xf32> to vector<64x4xf32>
    %20 = arith.subf %19, %9 : vector<64x4xf32>
    %21 = math.exp %20 : vector<64x4xf32>
    %22 = arith.addf %18, %21 : vector<64x4xf32>
    %23 = tpu.reciprocal %22 {approx = true} : vector<64x4xf32> -> vector<64x4xf32>
    %c0_5 = arith.constant 0 : index
    %c0_6 = arith.constant 0 : index
    %24 = vector.load %arg3[%c0_5, %c0_6] : memref<4x32xbf16, #tpu.memory_space<vmem>>, vector<4x32xbf16>
    %cst_7 = arith.constant 0.000000e+00 : f32
    %25 = vector.broadcast %cst_7 : f32 to vector<64x32xf32>
    %c0_8 = arith.constant 0 : index
    %c0_9 = arith.constant 0 : index
    %26 = vector.load %arg5[%c0_8, %c0_9] : memref<64x32xf32, #tpu.memory_space<vmem>>, vector<64x32xf32>
    tpu.vector_store %arg5[%c0_8, %c0_9], %25 {strides = array<i32>} : memref<64x32xf32, #tpu.memory_space<vmem>>, vector<64x32xf32>,
    %27 = vector.extract_strided_slice %4 {offsets = [8, 0], sizes = [56, 4], strides = [1, 1]} : vector<64x128xf32> to vector<56x4xf32>
    %28 = vector.extract_strided_slice %9 {offsets = [8, 0], sizes = [56, 4], strides = [1, 1]} : vector<64x4xf32> to vector<56x4xf32>
    %29 = arith.subf %27, %28 : vector<56x4xf32>
    %30 = math.exp %29 : vector<56x4xf32>
    %31 = vector.extract_strided_slice %23 {offsets = [8, 0], sizes = [56, 4], strides = [1, 1]} : vector<64x4xf32> to vector<56x4xf32>
    %32 = arith.mulf %30, %31 : vector<56x4xf32>
    %33 = arith.truncf %32 : vector<56x4xf32> to vector<56x4xbf16>
    %cst_10 = arith.constant dense<0.000000e+00> : vector<56x32xf32>
    %34 = tpu.matmul %33, %24, %cst_10 {dimension_numbers = #tpu.dot_dimension_numbers<[1], [0], [0], [1], [0, 0, 1, 1], [], []>} : vector<56x4xbf16>, vector<4x32xbf16>, vector<56x32xf32> -> vector<56x32xf32>
    %35 = vector.extract_strided_slice %1 {offsets = [0, 0], sizes = [56, 32], strides = [1, 1]} : vector<64x32xf32> to vector<56x32xf32>
    %c8 = arith.constant 8 : index
    %c0_11 = arith.constant 0 : index
    %36 = vector.load %arg5[%c8, %c0_11] : memref<64x32xf32, #tpu.memory_space<vmem>>, vector<56x32xf32>
    %37 = arith.mulf %34, %35 : vector<56x32xf32>
    %38 = arith.addf %36, %37 : vector<56x32xf32>
    %c8_12 = arith.constant 8 : index
    %c0_13 = arith.constant 0 : index
    %39 = vector.load %arg5[%c8_12, %c0_13] : memref<64x32xf32, #tpu.memory_space<vmem>>, vector<56x32xf32>
    tpu.vector_store %arg5[%c8_12, %c0_13], %38 {strides = array<i32>} : memref<64x32xf32, #tpu.memory_space<vmem>>, vector<56x32xf32>,
    %40 = vector.extract_strided_slice %4 {offsets = [0, 4], sizes = [64, 4], strides = [1, 1]} : vector<64x128xf32> to vector<64x4xf32>
    %41 = arith.subf %40, %9 : vector<64x4xf32>
    %42 = math.exp %41 : vector<64x4xf32>
    %43 = arith.mulf %42, %23 : vector<64x4xf32>
    %44 = arith.truncf %43 : vector<64x4xf32> to vector<64x4xbf16>
    %cst_14 = arith.constant dense<0.000000e+00> : vector<64x32xf32>
    %45 = tpu.matmul %44, %24, %cst_14 {dimension_numbers = #tpu.dot_dimension_numbers<[1], [0], [0], [1], [0, 0, 1, 1], [], []>} : vector<64x4xbf16>, vector<4x32xbf16>, vector<64x32xf32> -> vector<64x32xf32>
    %c0_15 = arith.constant 0 : index
    %c0_16 = arith.constant 0 : index
    %46 = vector.load %arg5[%c0_15, %c0_16] : memref<64x32xf32, #tpu.memory_space<vmem>>, vector<64x32xf32>
    %47 = arith.mulf %45, %1 : vector<64x32xf32>
    %48 = arith.addf %46, %47 : vector<64x32xf32>
    %c0_17 = arith.constant 0 : index
    %c0_18 = arith.constant 0 : index
    %49 = vector.load %arg5[%c0_17, %c0_18] : memref<64x32xf32, #tpu.memory_space<vmem>>, vector<64x32xf32>
    tpu.vector_store %arg5[%c0_17, %c0_18], %48 {strides = array<i32>} : memref<64x32xf32, #tpu.memory_space<vmem>>, vector<64x32xf32>,
    %50 = vector.extract_strided_slice %4 {offsets = [0, 8], sizes = [56, 4], strides = [1, 1]} : vector<64x128xf32> to vector<56x4xf32>
    %51 = vector.extract_strided_slice %9 {offsets = [0, 0], sizes = [56, 4], strides = [1, 1]} : vector<64x4xf32> to vector<56x4xf32>
    %52 = arith.subf %50, %51 : vector<56x4xf32>
    %53 = math.exp %52 : vector<56x4xf32>
    %54 = vector.extract_strided_slice %23 {offsets = [0, 0], sizes = [56, 4], strides = [1, 1]} : vector<64x4xf32> to vector<56x4xf32>
    %55 = arith.mulf %53, %54 : vector<56x4xf32>
    %56 = arith.truncf %55 : vector<56x4xf32> to vector<56x4xbf16>
    %cst_19 = arith.constant dense<0.000000e+00> : vector<56x32xf32>
    %57 = tpu.matmul %56, %24, %cst_19 {dimension_numbers = #tpu.dot_dimension_numbers<[1], [0], [0], [1], [0, 0, 1, 1], [], []>} : vector<56x4xbf16>, vector<4x32xbf16>, vector<56x32xf32> -> vector<56x32xf32>
    %58 = vector.extract_strided_slice %1 {offsets = [8, 0], sizes = [56, 32], strides = [1, 1]} : vector<64x32xf32> to vector<56x32xf32>
    %c0_20 = arith.constant 0 : index
    %c0_21 = arith.constant 0 : index
    %59 = vector.load %arg5[%c0_20, %c0_21] : memref<64x32xf32, #tpu.memory_space<vmem>>, vector<56x32xf32>
    %60 = arith.mulf %57, %58 : vector<56x32xf32>
    %61 = arith.addf %59, %60 : vector<56x32xf32>
    %c0_22 = arith.constant 0 : index
    %c0_23 = arith.constant 0 : index
    %62 = vector.load %arg5[%c0_22, %c0_23] : memref<64x32xf32, #tpu.memory_space<vmem>>, vector<56x32xf32>
    tpu.vector_store %arg5[%c0_22, %c0_23], %61 {strides = array<i32>} : memref<64x32xf32, #tpu.memory_space<vmem>>, vector<56x32xf32>,
    %c0_24 = arith.constant 0 : index
    %c0_25 = arith.constant 0 : index
    %63 = vector.load %arg5[%c0_24, %c0_25] : memref<64x32xf32, #tpu.memory_space<vmem>>, vector<64x32xf32>
    %64 = vector.shape_cast %63 : vector<64x32xf32> to vector<8x8x32xf32>
    %c0_26 = arith.constant 0 : index
    %c0_27 = arith.constant 0 : index
    %c0_28 = arith.constant 0 : index
    %65 = vector.load %arg4[%c0_26, %c0_27, %c0_28] : memref<8x8x32xf32, #tpu.memory_space<vmem>>, vector<8x8x32xf32>
    tpu.vector_store %arg4[%c0_26, %c0_27, %c0_28], %64 {strides = array<i32>} : memref<8x8x32xf32, #tpu.memory_space<vmem>>, vector<8x8x32xf32>,
    return
  }
  func.func @transform_0(%arg0: i32) -> (i32, i32, i32) {
    %c0_i32 = arith.constant 0 : i32
    %c0_i32_0 = arith.constant 0 : i32
    %c0_i32_1 = arith.constant 0 : i32
    return %c0_i32, %arg0, %c0_i32_0 : i32, i32, i32
  }
  func.func @transform_1(%arg0: i32) -> (i32, i32) {
    %c0_i32 = arith.constant 0 : i32
    %c0_i32_0 = arith.constant 0 : i32
    %c0_i32_1 = arith.constant 0 : i32
    return %c0_i32, %c0_i32_0 : i32, i32
  }
  func.func @transform_2(%arg0: i32) -> (i32, i32) {
    %c0_i32 = arith.constant 0 : i32
    %c0_i32_0 = arith.constant 0 : i32
    %c0_i32_1 = arith.constant 0 : i32
    return %c0_i32, %c0_i32_0 : i32, i32
  }
  func.func @transform_3(%arg0: i32) -> (i32, i32, i32) {
    %c0_i32 = arith.constant 0 : i32
    %c0_i32_0 = arith.constant 0 : i32
    %c0_i32_1 = arith.constant 0 : i32
    return %c0_i32, %arg0, %c0_i32_0 : i32, i32, i32
  }
}

</mosaic_0001>

<bundles_post_ra>
// kernel: tpu_custom_call.1
= control target key start
LH: loop header
LB: loop body
LE: loop exit
PB: predicated region body
PF: predicated region fallthrough
CT: control target
= control target key end

     0   :  { %8 = vsyncpa [#allocation4], 0  ;;  %s1385_s0 = inlined_call_operand.hbm [shape: f32[8,8,32], index: 0, kind: input, shape index: {}]   ;;  %s1386_s1 = inlined_call_operand.hbm [shape: bf16[32,128], index: 1, kind: input, shape index: {}]   ;;  %s1387_s2 = inlined_call_operand.hbm [shape: bf16[4,32], index: 2, kind: input, shape index: {}]   ;;  %s1388_s3 = inlined_call_operand.hbm [shape: f32[8,8,32], index: 3, kind: output, shape index: {}]  }
   0x1   :  { %9 = vsyncpa [#allocation7], 0  ;;  %s28_s14 = sshll.u32 %s1386_s1, 4  ;;  %s29_s14 = int_to_ptr.hbm [resolvable:$true] %s28_s14 }
   0x2   :  { %10 = vsyncpa [#allocation5], 0  ;;  %s1000_s15 = smov [#allocation6]   ;;  %s15_s19 = sshll.u32 %s1385_s0, 4  ;;  %s16_s19 = int_to_ptr.hbm [resolvable:$true] %s15_s19 }
   0x3   :  { %s30_s16 = sshll.u32 %s1000_s15, 4  ;;  %s1001_s20 = smov 64   ;;  %s31_s16 = int_to_ptr.vmem [resolvable:$true] %s30_s16 }
   0x4   :  { %s1002_s21 = smov 4   ;;  %s1003_s22 = smov [#allocation3]  }
   0x5   :  { %36 = dma.hbm_to_vmem [thread:$0]  %s29_s14, 256, %s31_s16, [#allocation7], %s1001_s20, %s1001_s20, %s1002_s21  }
   0x6   :  { %s17_s23 = sshll.u32 %s1003_s22, 4  ;;  %s1004_s24 = smov 128   ;;  %s18_s23 = int_to_ptr.vmem [resolvable:$true] %s17_s23 }
   0x7   :  { %s1005_s25 = smov 8   ;;  %s42_s27 = sshll.u32 %s1387_s2, 4  ;;  %s43_s27 = int_to_ptr.hbm [resolvable:$true] %s42_s27 }
   0x8   :  { %23 = dma.hbm_to_vmem [thread:$0]  %s16_s19, 1024, %s18_s23, [#allocation4], %s1004_s24, %s1004_s24, %s1005_s25  }
   0x9   :  { %s1006_s0 = smov [#allocation8]  }
   0xa   :  { %s44_s28 = sshll.u32 %s1006_s0, 4  ;;  %s45_s28 = int_to_ptr.vmem [resolvable:$true] %s44_s28 }
   0xb   :  { %47 = dma.hbm_to_vmem [thread:$0]  %s43_s27, 32, %s45_s28, [#allocation7]  }
   0xc   :  { %994 = dma.done.wait [#allocation4], 1024  }
   0xd   :  { %995 = vsyncadd [#allocation4], 4294966272 }
   0xe   :  { %996 = dma.done.wait [#allocation7], 288  }
   0xf   :  { %997 = vsyncadd [#allocation7], 4294967008  ;;  %v822_v0 = vld [vmem:[#allocation6 + $0x8] sm:$0xff]  ;;  %v821_v1 = vld [vmem:[#allocation6] sm:$0xff]  ;;  %vm89_vm0 = vcmask 261120   ;;  %s1007_s2 = smov 120  }
  0x10   :  { %108 = vmatpush.bf16.msra.mxu0 %v822_v0  ;;  %v1044_v2 = vld [vmem:[#allocation3] sm:$0xff]  ;;  %v1046_v3 = vld [vmem:[#allocation3 + $0x8] sm:$0xff]  ;;  %v1051_v5 = vld [vmem:[#allocation3 + $0x10] sm:$0xff]  ;;  %s1008_s29 = smov 124   ;;  %vm460_vm1 = vcmask 1041408   ;;  %vm447_vm2 = vcmask 31744  }
  0x11   :  { %v69_v4 = vpack.c.bf16 %v1046_v3, %v1044_v2  ;;  %v1053_v6 = vld [vmem:[#allocation3 + $0x18] sm:$0xff]  ;;  %v1058_v8 = vld [vmem:[#allocation3 + $0x20] sm:$0xff]  ;;  %v1060_v9 = vld [vmem:[#allocation3 + $0x28] sm:$0xff]  ;;  %s1010_s30 = smov [#allocation9]   ;;  %s783_s7 = sshll.u32 %s1388_s3, 4  ;;  %s784_s7 = int_to_ptr.hbm [resolvable:$true] %s783_s7 }
  0x12   :  { %v70_v7 = vpack.c.bf16 %v1053_v6, %v1051_v5  ;;  %v71_v10 = vpack.c.bf16 %v1060_v9, %v1058_v8  ;;  %v1065_v11 = vld [vmem:[#allocation3 + $0x30] sm:$0xff]  ;;  %v1067_v12 = vld [vmem:[#allocation3 + $0x38] sm:$0xff]  ;;  %s781_s4 = sshll.u32 %s1010_s30, 4  ;;  %s782_s4 = int_to_ptr.vmem [resolvable:$true] %s781_s4 }
  0x13   :  { %v72_v13 = vpack.c.bf16 %v1067_v12, %v1065_v11 }
  0x14   :  { %109 = vmatpush.bf16.msra.mxu0 %v821_v1 }
  0x17   :  { %805 = vmatmul.msk.bf16.vlgmr.msra.gmra.mxu0 %vm89_vm0, %v69_v4 }
  0x27   :  { %806 = vmatmul.msk.bf16.gmra.mxu0 %vm89_vm0, %v70_v7 }
  0x37   :  { %807 = vmatmul.msk.bf16.gmra.mxu0 %vm89_vm0, %v71_v10 }
  0x47   :  { %808 = vmatmul.msk.bf16.gmra.mxu0 %vm89_vm0, %v72_v13 }
  0x94   :  { %v1072_v14 = vpop.f32.mrf.mxu0 }
  0x95   :  { %171 = vrot.lane.b32.xlu1 %v1072_v14, %s1007_s2  ;;  %139 = vrot.lane.b32.xlu0 %v1072_v14, %s1008_s29 }
  0x9c   :  { %v1078_v15 = vpop.f32.mrf.mxu0 }
  0x9d   :  { %173 = vrot.lane.b32.xlu1 %v1078_v15, %s1007_s2  ;;  %141 = vrot.lane.b32.xlu0 %v1078_v15, %s1008_s29 }
  0xa4   :  { %v1084_v16 = vpop.f32.mrf.mxu0 }
  0xa5   :  { %175 = vrot.lane.b32.xlu0 %v1084_v16, %s1007_s2  ;;  %143 = vrot.lane.b32.xlu2 %v1084_v16, %s1008_s29 }
  0xac   :  { %v1090_v17 = vpop.f32.mrf.mxu0 }
  0xad   :  { %177 = vrot.lane.b32.xlu1 %v1090_v17, %s1007_s2  ;;  %145 = vrot.lane.b32.xlu2 %v1090_v17, %s1008_s29 }
  0xb4   :  { %v1096_v18 = vpop.f32.mrf.mxu0 }
  0xb5   :  { %179 = vrot.lane.b32.xlu1 %v1096_v18, %s1007_s2  ;;  %147 = vrot.lane.b32.xlu2 %v1096_v18, %s1008_s29 }
  0xbc   :  { %v1102_v19 = vpop.f32.mrf.mxu0 }
  0xbd   :  { %149 = vrot.lane.b32.xlu0 %v1102_v19, %s1008_s29  ;;  %181 = vrot.lane.b32.xlu2 %v1102_v19, %s1007_s2 }
  0xc4   :  { %v1108_v20 = vpop.f32.mrf.mxu0 }
  0xc5   :  { %151 = vrot.lane.b32.xlu1 %v1108_v20, %s1008_s29 }
  0xcc   :  { %v1112_v21 = vpop.f32.mrf.mxu0 }
  0xcd   :  { %153 = vrot.lane.b32.xlu2 %v1112_v21, %s1008_s29 }
  0xff   :  { %v144_v26 = vpop.permute.xlu2 %143 }
 0x100   :  { %v165_v31 = vmax.f32 %v1084_v16, %v144_v26 }
 0x107   :  { %v172_v22 = vpop.permute.xlu1 %171  ;;  %v140_v23 = vpop.permute.xlu0 %139 }
 0x108   :  { %v163_v24 = vmax.f32 %v1072_v14, %v140_v23  ;;  %v146_v34 = vpop.permute.xlu2 %145 }
 0x109   :  { %v166_v35 = vmax.f32 %v1090_v17, %v146_v34 }
 0x10a   :  { %v1117_v25 = vmax.f32 %v163_v24, %v172_v22 }
 0x10c   :  { %243 = vrot.lane.b32.xlu0 %v1117_v25, %s1002_s21  ;;  %331 = vrot.lane.b32.xlu2 %v1117_v25, %s1005_s25 }
 0x10f   :  { %v142_v27 = vpop.permute.xlu0 %141  ;;  %v174_v29 = vpop.permute.xlu1 %173 }
 0x110   :  { %v164_v28 = vmax.f32 %v1078_v15, %v142_v27  ;;  %v148_v38 = vpop.permute.xlu2 %147 }
 0x111   :  { %v167_v39 = vmax.f32 %v1096_v18, %v148_v38 }
 0x112   :  { %v1124_v30 = vmax.f32 %v164_v28, %v174_v29 }
 0x114   :  { %333 = vrot.lane.b32.xlu0 %v1124_v30, %s1005_s25  ;;  %245 = vrot.lane.b32.xlu1 %v1124_v30, %s1002_s21 }
 0x117   :  { %v176_v32 = vpop.permute.xlu0 %175 }
 0x118   :  { %v1131_v33 = vmax.f32 %v165_v31, %v176_v32  ;;  %v182_v44 = vpop.permute.xlu2 %181 }
 0x11a   :  { %247 = vrot.lane.b32.xlu2 %v1131_v33, %s1002_s21 }
 0x11c   :  { %183 = vrot.lane.b32.xlu0 %v1108_v20, %s1007_s2  ;;  %185 = vrot.lane.b32.xlu1 %v1112_v21, %s1007_s2 }
 0x11f   :  { %v178_v36 = vpop.permute.xlu1 %177 }
 0x120   :  { %v1140_v37 = vmax.f32 %v166_v35, %v178_v36 }
 0x122   :  { %337 = vrot.lane.b32.xlu2 %v1140_v37, %s1005_s25 }
 0x124   :  { %249 = vrot.lane.b32.xlu0 %v1140_v37, %s1002_s21  ;;  %335 = vrot.lane.b32.xlu1 %v1131_v33, %s1005_s25 }
 0x127   :  { %v180_v40 = vpop.permute.xlu1 %179  ;;  %v154_v46 = vpop.permute.xlu2 %153 }
 0x128   :  { %v1149_v41 = vmax.f32 %v167_v39, %v180_v40  ;;  %v170_v58 = vmax.f32 %v1112_v21, %v154_v46 }
 0x12a   :  { %339 = vrot.lane.b32.xlu2 %v1149_v41, %s1005_s25 }
 0x12c   :  { %251 = vrot.lane.b32.xlu0 %v1149_v41, %s1002_s21 }
 0x12f   :  { %v150_v42 = vpop.permute.xlu0 %149 }
 0x130   :  { %v168_v43 = vmax.f32 %v1102_v19, %v150_v42 }
 0x132   :  { %v1156_v45 = vmax.f32 %v168_v43, %v182_v44 }
 0x134   :  { %341 = vrot.lane.b32.xlu0 %v1156_v45, %s1005_s25  ;;  %253 = vrot.lane.b32.xlu1 %v1156_v45, %s1002_s21 }
 0x137   :  { %v152_v48 = vpop.permute.xlu1 %151 }
 0x138   :  { %v169_v59 = vmax.f32 %v1108_v20, %v152_v48 }
 0x166   :  { %v332_v47 = vpop.permute.xlu2 %331 }
 0x167   :  { %v355_v7 = vsub.f32 %v1072_v14, %v332_v47 }
 0x169   :  { %v363_v22 = vmul.f32 1.442695, %v355_v7 }
 0x174   :  { %v248_v52 = vpop.permute.xlu2 %247 }
 0x175   :  { %v269_v57 = vsub.f32 %v1084_v16, %v248_v52 }
 0x177   :  { %v279_v0 = vmul.f32 1.442695, %v269_v57 }
 0x17c   :  { %v338_v60 = vpop.permute.xlu2 %337 }
 0x17d   :  { %v358_v13 = vsub.f32 %v1090_v17, %v338_v60 }
 0x17e   :  { %v244_v49 = vpop.permute.xlu0 %243 }
 0x17f   :  { %v267_v50 = vsub.f32 %v1072_v14, %v244_v49  ;;  %v369_v26 = vmul.f32 1.442695, %v358_v13 }
 0x181   :  { %v275_v51 = vmul.f32 1.442695, %v267_v50 }
 0x183   :  { %834 = vpow2.f32 %v275_v51 }
 0x184   :  { %v340_v29 = vpop.permute.xlu2 %339 }
 0x185   :  { %v359_v35 = vsub.f32 %v1096_v18, %v340_v29  ;;  %v205_v29 = vsub.f32 %v1084_v16, %v1131_v33 }
 0x186   :  { %v334_v53 = vpop.permute.xlu0 %333  ;;  %v246_v54 = vpop.permute.xlu1 %245 }
 0x187   :  { %v268_v56 = vsub.f32 %v1078_v15, %v246_v54  ;;  %v356_v10 = vsub.f32 %v1078_v15, %v334_v53  ;;  %v371_v42 = vmul.f32 1.442695, %v359_v35  ;;  %v203_v35 = vsub.f32 %v1072_v14, %v1117_v25 }
 0x188   :  { %v206_v14 = vsub.f32 %v1090_v17, %v1140_v37 }
 0x189   :  { %v1163_v55 = vpop.eup %834  ;;  %v277_v61 = vmul.f32 1.442695, %v268_v56  ;;  %v365_v23 = vmul.f32 1.442695, %v356_v10 }
 0x18a   :  { %299 = vrot.lane.b32.xlu0 %v1163_v55, %s1008_s29 }
 0x18b   :  { %836 = vpow2.f32 %v277_v61 }
 0x18c   :  { %838 = vpow2.f32 %v279_v0 }
 0x18d   :  { %840 = vpow2.f32 %v363_v22  ;;  %v427_v22 = vld [vmem:[#allocation8] sm:$0x3] }
 0x18e   :  { %v184_v62 = vpop.permute.xlu0 %183  ;;  %v186_v63 = vpop.permute.xlu1 %185  ;;  %842 = vpow2.f32 %v365_v23  ;;  %v462_v23 = vsel %vm460_vm1, %v427_v22, 0 }
 0x18f   :  { %v1171_v1 = vmax.f32 %v169_v59, %v184_v62  ;;  %v1173_v4 = vmax.f32 %v170_v58, %v186_v63  ;;  %844 = vpow2.f32 %v369_v26  ;;  %471 = vmatpush.bf16.msra.mxu1 %v462_v23  ;;  %595 = vmatpush.bf16.msra.mxu2 %v462_v23  ;;  %v204_v26 = vsub.f32 %v1078_v15, %v1124_v30 }
 0x190   :  { %712 = vmatpush.bf16.msra.mxu3 %v462_v23  ;;  %v211_v30 = vmul.f32 1.442695, %v203_v35  ;;  %v208_v35 = vsub.f32 %v1102_v19, %v1156_v45 }
 0x191   :  { %255 = vrot.lane.b32.xlu1 %v1171_v1, %s1002_s21  ;;  %343 = vrot.lane.b32.xlu2 %v1171_v1, %s1005_s25  ;;  %v1184_v28 = vpop.eup %836 }
 0x192   :  { %345 = vrot.lane.b32.xlu0 %v1173_v4, %s1005_s25  ;;  %v1186_v31 = vpop.eup %838 }
 0x193   :  { %v1197_v40 = vpop.eup %840 }
 0x194   :  { %v1199_v43 = vpop.eup %842 }
 0x195   :  { %v1201_v44 = vpop.eup %844 }
 0x196   :  { %v250_v24 = vpop.permute.xlu0 %249  ;;  %v336_v27 = vpop.permute.xlu1 %335 }
 0x197   :  { %v270_v32 = vsub.f32 %v1090_v17, %v250_v24  ;;  %v357_v34 = vsub.f32 %v1084_v16, %v336_v27  ;;  %v207_v17 = vsub.f32 %v1096_v18, %v1149_v41 }
 0x199   :  { %301 = vrot.lane.b32.xlu1 %v1184_v28, %s1008_s29  ;;  %257 = vrot.lane.b32.xlu2 %v1173_v4, %s1002_s21  ;;  %v281_v36 = vmul.f32 1.442695, %v270_v32  ;;  %v367_v38 = vmul.f32 1.442695, %v357_v34  ;;  %v213_v32 = vmul.f32 1.442695, %v204_v26 }
 0x19a   :  { %303 = vrot.lane.b32.xlu0 %v1186_v31, %s1008_s29  ;;  %v215_v34 = vmul.f32 1.442695, %v205_v29 }
 0x19b   :  { %846 = vpow2.f32 %v281_v36 }
 0x19c   :  { %848 = vpow2.f32 %v367_v38 }
 0x19d   :  { %850 = vpow2.f32 %v371_v42 }
 0x19e   :  { %v252_v39 = vpop.permute.xlu0 %251 }
 0x19f   :  { %v271_v46 = vsub.f32 %v1096_v18, %v252_v39 }
 0x1a1   :  { %389 = vrot.lane.b32.xlu2 %v1199_v43, %s1007_s2  ;;  %387 = vrot.lane.b32.xlu1 %v1197_v40, %s1007_s2  ;;  %v283_v47 = vmul.f32 1.442695, %v271_v46  ;;  %v1210_v49 = vpop.eup %846 }
 0x1a2   :  { %393 = vrot.lane.b32.xlu0 %v1201_v44, %s1007_s2  ;;  %v1213_v52 = vpop.eup %848 }
 0x1a3   :  { %v1215_v53 = vpop.eup %850  ;;  %852 = vpow2.f32 %v283_v47 }
 0x1a6   :  { %v254_v48 = vpop.permute.xlu1 %253  ;;  %v342_v50 = vpop.permute.xlu0 %341 }
 0x1a7   :  { %v272_v51 = vsub.f32 %v1102_v19, %v254_v48  ;;  %v360_v56 = vsub.f32 %v1102_v19, %v342_v50 }
 0x1a9   :  { %v285_v54 = vmul.f32 1.442695, %v272_v51  ;;  %391 = vrot.lane.b32.xlu2 %v1213_v52, %s1007_s2  ;;  %305 = vrot.lane.b32.xlu1 %v1210_v49, %s1008_s29  ;;  %v373_v57 = vmul.f32 1.442695, %v360_v56  ;;  %v1224_v58 = vpop.eup %852 }
 0x1aa   :  { %395 = vrot.lane.b32.xlu0 %v1215_v53, %s1007_s2 }
 0x1ab   :  { %854 = vpow2.f32 %v285_v54 }
 0x1ac   :  { %856 = vpow2.f32 %v373_v57 }
 0x1b1   :  { %307 = vrot.lane.b32.xlu1 %v1224_v58, %s1008_s29  ;;  %v1228_v59 = vpop.eup %854 }
 0x1b2   :  { %309 = vrot.lane.b32.xlu2 %v1228_v59, %s1008_s29  ;;  %v1232_v60 = vpop.eup %856 }
 0x1b9   :  { %397 = vrot.lane.b32.xlu1 %v1232_v60, %s1007_s2 }
 0x1eb   :  { %v344_v61 = vpop.permute.xlu2 %343 }
 0x1ec   :  { %v361_v62 = vsub.f32 %v1108_v20, %v344_v61 }
 0x1ee   :  { %v375_v63 = vmul.f32 1.442695, %v361_v62 }
 0x1f0   :  { %858 = vpow2.f32 %v375_v63  ;;  %v217_v63 = vmul.f32 1.442695, %v206_v14 }
 0x1f3   :  { %v258_v0 = vpop.permute.xlu2 %257 }
 0x1f4   :  { %v274_v7 = vsub.f32 %v1112_v21, %v258_v0 }
 0x1f6   :  { %v1238_v10 = vpop.eup %858  ;;  %v289_v13 = vmul.f32 1.442695, %v274_v7 }
 0x1f7   :  { %399 = vrot.lane.b32.xlu1 %v1238_v10, %s1007_s2 }
 0x1f8   :  { %860 = vpow2.f32 %v289_v13 }
 0x1f9   :  { %862 = vpow2.f32 %v213_v32  ;;  %v219_v32 = vmul.f32 1.442695, %v207_v17 }
 0x1fa   :  { %864 = vpow2.f32 %v215_v34 }
 0x1fb   :  { %v390_v38 = vpop.permute.xlu2 %389 }
 0x1fc   :  { %v300_v24 = vpop.permute.xlu0 %299 }
 0x1fe   :  { %v1244_v27 = vpop.eup %860 }
 0x1ff   :  { %313 = vrot.lane.b32.xlu0 %v1244_v27, %s1008_s29  ;;  %v863_v16 = vpop.eup %862 }
 0x200   :  { %v865_v48 = vpop.eup %864 }
 0x203   :  { %v256_v36 = vpop.permute.xlu1 %255  ;;  %v392_v56 = vpop.permute.xlu2 %391 }
 0x204   :  { %v273_v39 = vsub.f32 %v1108_v20, %v256_v36  ;;  %v346_v42 = vpop.permute.xlu0 %345 }
 0x205   :  { %v362_v46 = vsub.f32 %v1112_v21, %v346_v42  ;;  %v221_v42 = vmul.f32 1.442695, %v208_v35 }
 0x206   :  { %v287_v15 = vmul.f32 1.442695, %v273_v39 }
 0x207   :  { %v377_v33 = vmul.f32 1.442695, %v362_v46 }
 0x208   :  { %866 = vpow2.f32 %v287_v15 }
 0x209   :  { %868 = vpow2.f32 %v211_v30 }
 0x20a   :  { %870 = vpow2.f32 %v377_v33 }
 0x20b   :  { %v302_v47 = vpop.permute.xlu1 %301 }
 0x20c   :  { %v324_v50 = vadd.f32 %v863_v16, %v302_v47  ;;  %v304_v51 = vpop.permute.xlu0 %303  ;;  %v310_v33 = vpop.permute.xlu2 %309 }
 0x20d   :  { %v325_v25 = vadd.f32 %v865_v48, %v304_v51 }
 0x20e   :  { %v1256_v54 = vpop.eup %866  ;;  %v412_v57 = vadd.f32 %v390_v38, %v324_v50 }
 0x20f   :  { %v413_v61 = vadd.f32 %v392_v56, %v325_v25  ;;  %311 = vrot.lane.b32.xlu2 %v1256_v54, %s1008_s29  ;;  %v869_v62 = vpop.eup %868 }
 0x210   :  { %872 = vrcp.f32 %v412_v57  ;;  %v323_v0 = vadd.f32 %v869_v62, %v300_v24  ;;  %v871_v22 = vpop.eup %870 }
 0x211   :  { %874 = vrcp.f32 %v413_v61 }
 0x212   :  { %876 = vpow2.f32 %v217_v63  ;;  %v209_v63 = vsub.f32 %v1108_v20, %v1171_v1  ;;  %v1009_v1 = vmov 0.0  }
 0x213   :  { %v388_v7 = vpop.permute.xlu1 %387  ;;  %429 = vst.msk [vmem:[#allocation2 + $0x8] sm:$0xff] %vm89_vm0, %v1009_v1 }
 0x214   :  { %v411_v13 = vadd.f32 %v388_v7, %v323_v0  ;;  %v394_v36 = vpop.permute.xlu0 %393  ;;  %v223_v0 = vmul.f32 1.442695, %v209_v63  ;;  %v210_v7 = vsub.f32 %v1112_v21, %v1173_v4  ;;  %428 = vst.msk [vmem:[#allocation2] sm:$0xff] %vm89_vm0, %v1009_v1 }
 0x215   :  { %430 = vst.msk [vmem:[#allocation2 + $0x10] sm:$0xff] %vm89_vm0, %v1009_v1 }
 0x216   :  { %v873_v37 = vpop.eup %872  ;;  %878 = vrcp.f32 %v411_v13  ;;  %v225_v13 = vmul.f32 1.442695, %v210_v7  ;;  %431 = vst.msk [vmem:[#allocation2 + $0x18] sm:$0xff] %vm89_vm0, %v1009_v1 }
 0x217   :  { %v875_v23 = vpop.eup %874  ;;  %401 = vrot.lane.b32.xlu2 %v871_v22, %s1007_s2  ;;  %530 = vrot.lane.b32.xlu1 %v873_v37, %s1002_s21  ;;  %v436_v26 = vmul.f32 %v873_v37, %v863_v16  ;;  %880 = vpow2.f32 %v219_v32  ;;  %432 = vst.msk [vmem:[#allocation2 + $0x20] sm:$0xff] %vm89_vm0, %v1009_v1 }
 0x218   :  { %v437_v29 = vmul.f32 %v875_v23, %v865_v48  ;;  %v877_v24 = vpop.eup %876  ;;  %433 = vst.msk [vmem:[#allocation2 + $0x28] sm:$0xff] %vm89_vm0, %v1009_v1 }
 0x219   :  { %434 = vst.msk [vmem:[#allocation2 + $0x30] sm:$0xff] %vm89_vm0, %v1009_v1 }
 0x21a   :  { %v443_v34 = vpack.c.bf16 %v437_v29, %v436_v26  ;;  %435 = vst.msk [vmem:[#allocation2 + $0x38] sm:$0xff] %vm89_vm0, %v1009_v1 }
 0x21b   :  { %v306_v38 = vpop.permute.xlu1 %305 }
 0x21c   :  { %v879_v39 = vpop.eup %878  ;;  %v326_v18 = vadd.f32 %v877_v24, %v306_v38  ;;  %809 = vmatmul.msk.bf16.vlgmr.msra.gmra.mxu1 %vm447_vm2, %v443_v34  ;;  %v396_v45 = vpop.permute.xlu0 %395 }
 0x21d   :  { %528 = vrot.lane.b32.xlu0 %v879_v39, %s1002_s21  ;;  %v881_v15 = vpop.eup %880 }
 0x21e   :  { %v414_v41 = vadd.f32 %v394_v36, %v326_v18 }
 0x21f   :  { %649 = vrot.lane.b32.xlu2 %v879_v39, %s1005_s25  ;;  %532 = vrot.lane.b32.xlu1 %v875_v23, %s1002_s21 }
 0x220   :  { %882 = vrcp.f32 %v414_v41 }
 0x221   :  { %884 = vpow2.f32 %v221_v42 }
 0x223   :  { %v308_v30 = vpop.permute.xlu1 %307 }
 0x224   :  { %v327_v19 = vadd.f32 %v881_v15, %v308_v30 }
 0x225   :  { %651 = vrot.lane.b32.xlu0 %v873_v37, %s1005_s25 }
 0x226   :  { %v883_v46 = vpop.eup %882  ;;  %v415_v16 = vadd.f32 %v396_v45, %v327_v19 }
 0x227   :  { %534 = vrot.lane.b32.xlu2 %v883_v46, %s1002_s21  ;;  %655 = vrot.lane.b32.xlu1 %v883_v46, %s1005_s25  ;;  %v885_v47 = vpop.eup %884  ;;  %v438_v25 = vmul.f32 %v883_v46, %v877_v24 }
 0x228   :  { %886 = vrcp.f32 %v415_v16  ;;  %v328_v48 = vadd.f32 %v885_v47, %v310_v33 }
 0x22b   :  { %v398_v50 = vpop.permute.xlu1 %397 }
 0x22c   :  { %v416_v51 = vadd.f32 %v398_v50, %v328_v48 }
 0x22d   :  { %653 = vrot.lane.b32.xlu0 %v875_v23, %s1005_s25 }
 0x22e   :  { %v887_v14 = vpop.eup %886  ;;  %888 = vrcp.f32 %v416_v51 }
 0x22f   :  { %536 = vrot.lane.b32.xlu2 %v887_v14, %s1002_s21  ;;  %657 = vrot.lane.b32.xlu1 %v887_v14, %s1005_s25  ;;  %v439_v56 = vmul.f32 %v887_v14, %v881_v15  ;;  %890 = vpow2.f32 %v223_v0 }
 0x230   :  { %892 = vpow2.f32 %v225_v13 }
 0x231   :  { %v444_v57 = vpack.c.bf16 %v439_v56, %v438_v25 }
 0x233   :  { %810 = vmatmul.msk.bf16.gmra.mxu1 %vm447_vm2, %v444_v57 }
 0x234   :  { %v889_v61 = vpop.eup %888 }
 0x235   :  { %538 = vrot.lane.b32.xlu0 %v889_v61, %s1002_s21  ;;  %v440_v62 = vmul.f32 %v889_v61, %v885_v47  ;;  %v891_v22 = vpop.eup %890 }
 0x236   :  { %v893_v29 = vpop.eup %892 }
 0x237   :  { %659 = vrot.lane.b32.xlu2 %v889_v61, %s1005_s25 }
 0x269   :  { %v312_v17 = vpop.permute.xlu2 %311  ;;  %v400_v23 = vpop.permute.xlu1 %399 }
 0x26a   :  { %v329_v37 = vadd.f32 %v891_v22, %v312_v17 }
 0x26c   :  { %v417_v26 = vadd.f32 %v400_v23, %v329_v37 }
 0x26e   :  { %894 = vrcp.f32 %v417_v26 }
 0x271   :  { %v314_v32 = vpop.permute.xlu0 %313  ;;  %v402_v24 = vpop.permute.xlu2 %401 }
 0x272   :  { %v330_v34 = vadd.f32 %v893_v29, %v314_v32 }
 0x274   :  { %v895_v35 = vpop.eup %894  ;;  %v418_v36 = vadd.f32 %v402_v24, %v330_v34 }
 0x275   :  { %540 = vrot.lane.b32.xlu1 %v895_v35, %s1002_s21  ;;  %v441_v20 = vmul.f32 %v895_v35, %v891_v22 }
 0x276   :  { %896 = vrcp.f32 %v418_v36 }
 0x277   :  { %v445_v21 = vpack.c.bf16 %v441_v20, %v440_v62 }
 0x279   :  { %811 = vmatmul.msk.bf16.gmra.mxu1 %vm447_vm2, %v445_v21  ;;  %v650_v38 = vpop.permute.xlu2 %649 }
 0x27a   :  { %v670_v51 = vmul.f32 %v1197_v40, %v650_v38 }
 0x27c   :  { %v897_v4 = vpop.eup %896 }
 0x27d   :  { %661 = vrot.lane.b32.xlu1 %v895_v35, %s1005_s25  ;;  %542 = vrot.lane.b32.xlu2 %v897_v4, %s1002_s21  ;;  %v442_v39 = vmul.f32 %v897_v4, %v893_v29  ;;  %v495_v35 = vld [vmem:[#allocation2 + $0x20] sm:$0xff] }
 0x27f   :  { %v446_v18 = vpack.c.bf16 %v442_v39, %v442_v39 }
 0x281   :  { %v535_v42 = vpop.permute.xlu2 %534 }
 0x282   :  { %v555_v46 = vmul.f32 %v1210_v49, %v535_v42  ;;  %v496_v42 = vld [vmem:[#allocation2 + $0x28] sm:$0xff] }
 0x289   :  { %v531_v41 = vpop.permute.xlu1 %530  ;;  %812 = vmatmul.msk.bf16.gmra.mxu1 %vm447_vm2, %v446_v18  ;;  %v537_v48 = vpop.permute.xlu2 %536 }
 0x28a   :  { %v553_v30 = vmul.f32 %v1184_v28, %v531_v41 }
 0x28f   :  { %v529_v15 = vpop.permute.xlu0 %528 }
 0x290   :  { %v552_v19 = vmul.f32 %v1163_v55, %v529_v15  ;;  %v492_v55 = vld [vmem:[#allocation2 + $0x8] sm:$0xff] }
 0x291   :  { %v533_v45 = vpop.permute.xlu1 %532 }
 0x292   :  { %v560_v16 = vpack.c.bf16 %v553_v30, %v552_v19  ;;  %v554_v33 = vmul.f32 %v1186_v31, %v533_v45  ;;  %v660_v31 = vpop.permute.xlu2 %659 }
 0x293   :  { %v675_v7 = vmul.f32 %v1232_v60, %v660_v31 }
 0x294   :  { %v561_v47 = vpack.c.bf16 %v555_v46, %v554_v33  ;;  %568 = vrot.lane.b32.xlu0 %v560_v16, %s1008_s29 }
 0x296   :  { %570 = vrot.lane.b32.xlu2 %v561_v47, %s1008_s29 }
 0x297   :  { %v652_v50 = vpop.permute.xlu0 %651 }
 0x298   :  { %v671_v14 = vmul.f32 %v1199_v43, %v652_v50  ;;  %v493_v43 = vld [vmem:[#allocation2 + $0x10] sm:$0xff] }
 0x299   :  { %v656_v28 = vpop.permute.xlu1 %655  ;;  %v473_v25 = vpop.f32.mrf.mxu1 }
 0x29a   :  { %v677_v56 = vpack.c.bf16 %v671_v14, %v670_v51  ;;  %v499_v49 = vmul.f32 %v473_v25, %v1044_v2  ;;  %v673_v62 = vmul.f32 %v1201_v44, %v656_v28 }
 0x29c   :  { %v506_v57 = vadd.f32 %v499_v49, %v492_v55  ;;  %685 = vrot.lane.b32.xlu0 %v677_v56, %s1007_s2 }
 0x29e   :  { %513 = vst.msk [vmem:[#allocation2 + $0x8] sm:$0xff] %vm89_vm0, %v506_v57  ;;  %v617_v57 = vld [vmem:[#allocation2] sm:$0xff] }
 0x29f   :  { %v654_v61 = vpop.permute.xlu0 %653 }
 0x2a0   :  { %v672_v63 = vmul.f32 %v1213_v52, %v654_v61  ;;  %v556_v52 = vmul.f32 %v1224_v58, %v537_v48 }
 0x2a1   :  { %v658_v40 = vpop.permute.xlu1 %657  ;;  %v475_v0 = vpop.f32.mrf.mxu1 }
 0x2a2   :  { %v678_v13 = vpack.c.bf16 %v673_v62, %v672_v63  ;;  %v674_v22 = vmul.f32 %v1215_v53, %v658_v40  ;;  %v500_v17 = vmul.f32 %v475_v0, %v1046_v3  ;;  %v494_v53 = vld [vmem:[#allocation2 + $0x18] sm:$0xff] }
 0x2a4   :  { %v679_v37 = vpack.c.bf16 %v675_v7, %v674_v22  ;;  %v507_v23 = vadd.f32 %v500_v17, %v493_v43  ;;  %687 = vrot.lane.b32.xlu0 %v678_v13, %s1007_s2 }
 0x2a5   :  { %v618_v0 = vld [vmem:[#allocation2 + $0x8] sm:$0xff] }
 0x2a6   :  { %514 = vst.msk [vmem:[#allocation2 + $0x10] sm:$0xff] %vm89_vm0, %v507_v23  ;;  %689 = vrot.lane.b32.xlu2 %v679_v37, %s1007_s2 }
 0x2a7   :  { %v539_v44 = vpop.permute.xlu0 %538 }
 0x2a8   :  { %v557_v26 = vmul.f32 %v1228_v59, %v539_v44 }
 0x2aa   :  { %v562_v29 = vpack.c.bf16 %v557_v26, %v556_v52 }
 0x2ac   :  { %572 = vrot.lane.b32.xlu1 %v562_v29, %s1008_s29 }
 0x2ad   :  { %v619_v23 = vld [vmem:[#allocation2 + $0x10] sm:$0xff] }
 0x2b0   :  { %v478_v60 = vpop.f32.mrf.mxu1 }
 0x2b1   :  { %v501_v32 = vmul.f32 %v478_v60, %v1051_v5 }
 0x2b3   :  { %v508_v34 = vadd.f32 %v501_v32, %v494_v53 }
 0x2b5   :  { %515 = vst.msk [vmem:[#allocation2 + $0x18] sm:$0xff] %vm89_vm0, %v508_v34 }
 0x2b8   :  { %v480_v24 = vpop.f32.mrf.mxu1 }
 0x2b9   :  { %v502_v36 = vmul.f32 %v480_v24, %v1053_v6 }
 0x2bb   :  { %v509_v20 = vadd.f32 %v502_v36, %v495_v35 }
 0x2bc   :  { %v620_v34 = vld [vmem:[#allocation2 + $0x18] sm:$0xff] }
 0x2bd   :  { %516 = vst.msk [vmem:[#allocation2 + $0x20] sm:$0xff] %vm89_vm0, %v509_v20 }
 0x2d7   :  { %v543_v58 = vpop.permute.xlu2 %542 }
 0x2d8   :  { %v559_v59 = vmul.f32 %v1244_v27, %v543_v58  ;;  %v497_v27 = vld [vmem:[#allocation2 + $0x30] sm:$0xff] }
 0x2e7   :  { %v541_v1 = vpop.permute.xlu1 %540 }
 0x2e8   :  { %v558_v21 = vmul.f32 %v1256_v54, %v541_v1 }
 0x2ea   :  { %v563_v4 = vpack.c.bf16 %v559_v59, %v558_v21  ;;  %v621_v21 = vld [vmem:[#allocation2 + $0x20] sm:$0xff] }
 0x2ec   :  { %574 = vrot.lane.b32.xlu0 %v563_v4, %s1008_s29 }
 0x2ef   :  { %v662_v38 = vpop.permute.xlu1 %661 }
 0x2f0   :  { %v676_v39 = vmul.f32 %v1238_v10, %v662_v38  ;;  %v498_v10 = vld [vmem:[#allocation2 + $0x38] sm:$0xff]  ;;  %v571_v51 = vpop.permute.xlu2 %570 }
 0x2f2   :  { %v680_v18 = vpack.c.bf16 %v676_v39, %v676_v39 }
 0x2f4   :  { %691 = vrot.lane.b32.xlu1 %v680_v18, %s1007_s2 }
 0x2f6   :  { %v483_v41 = vpop.f32.mrf.mxu1 }
 0x2f7   :  { %v503_v15 = vmul.f32 %v483_v41, %v1058_v8 }
 0x2f9   :  { %v510_v30 = vadd.f32 %v503_v15, %v496_v42 }
 0x2fb   :  { %517 = vst.msk [vmem:[#allocation2 + $0x28] sm:$0xff] %vm89_vm0, %v510_v30 }
 0x2fe   :  { %v485_v19 = vpop.f32.mrf.mxu1 }
 0x2ff   :  { %v504_v54 = vmul.f32 %v485_v19, %v1060_v9 }
 0x300   :  { %v690_v25 = vpop.permute.xlu2 %689 }
 0x301   :  { %v511_v45 = vadd.f32 %v504_v54, %v497_v27 }
 0x302   :  { %v622_v30 = vld [vmem:[#allocation2 + $0x28] sm:$0xff] }
 0x303   :  { %518 = vst.msk [vmem:[#allocation2 + $0x30] sm:$0xff] %vm89_vm0, %v511_v45 }
 0x306   :  { %v569_v46 = vpop.permute.xlu0 %568  ;;  %v488_v16 = vpop.f32.mrf.mxu1 }
 0x307   :  { %v505_v33 = vmul.f32 %v488_v16, %v1065_v11  ;;  %813 = vmatmul.msk.bf16.vlgmr.msra.gmra.mxu2 %vm447_vm2, %v569_v46 }
 0x309   :  { %v512_v47 = vadd.f32 %v505_v33, %v498_v10 }
 0x30b   :  { %519 = vst.msk [vmem:[#allocation2 + $0x38] sm:$0xff] %vm89_vm0, %v512_v47 }
 0x30e   :  { %v490_v48 = vpop.f32.mrf.mxu1  ;;  %v686_v50 = vpop.permute.xlu0 %685 }
 0x30f   :  { %817 = vmatmul.msk.bf16.vlgmr.msra.gmra.mxu3 %vm447_vm2, %v686_v50 }
 0x316   :  { %v688_v14 = vpop.permute.xlu0 %687 }
 0x317   :  { %814 = vmatmul.msk.bf16.gmra.mxu2 %vm447_vm2, %v571_v51  ;;  %v623_v51 = vld [vmem:[#allocation2 + $0x30] sm:$0xff] }
 0x31e   :  { %v573_v28 = vpop.permute.xlu1 %572 }
 0x31f   :  { %818 = vmatmul.msk.bf16.gmra.mxu3 %vm447_vm2, %v688_v14 }
 0x327   :  { %815 = vmatmul.msk.bf16.gmra.mxu2 %vm447_vm2, %v573_v28 }
 0x32f   :  { %819 = vmatmul.msk.bf16.gmra.mxu3 %vm447_vm2, %v690_v25 }
 0x35e   :  { %v575_v55 = vpop.permute.xlu0 %574 }
 0x35f   :  { %816 = vmatmul.msk.bf16.gmra.mxu2 %vm447_vm2, %v575_v55 }
 0x366   :  { %v692_v56 = vpop.permute.xlu1 %691 }
 0x367   :  { %820 = vmatmul.msk.bf16.gmra.mxu3 %vm447_vm2, %v692_v56  ;;  %v624_v56 = vld [vmem:[#allocation2 + $0x38] sm:$0xff] }
 0x38a   :  { %v597_v49 = vpop.f32.mrf.mxu2 }
 0x38b   :  { %v625_v31 = vmul.f32 %v597_v49, %v1044_v2 }
 0x38d   :  { %v633_v61 = vadd.f32 %v625_v31, %v617_v57 }
 0x38f   :  { %641 = vst.msk [vmem:[#allocation2] sm:$0xff] %vm89_vm0, %v633_v61 }
 0x392   :  { %v599_v62 = vpop.f32.mrf.mxu2  ;;  %v714_v63 = vpop.f32.mrf.mxu3 }
 0x393   :  { %v626_v40 = vmul.f32 %v599_v62, %v1046_v3  ;;  %v740_v7 = vmul.f32 %v714_v63, %v1046_v3 }
 0x395   :  { %v634_v43 = vadd.f32 %v626_v40, %v618_v0 }
 0x396   :  { %v733_v13 = vld [vmem:[#allocation2] sm:$0xff] }
 0x397   :  { %642 = vst.msk [vmem:[#allocation2 + $0x8] sm:$0xff] %vm89_vm0, %v634_v43  ;;  %v747_v22 = vadd.f32 %v740_v7, %v733_v13 }
 0x399   :  { %754 = vst.msk [vmem:[#allocation2] sm:$0xff] %vm89_vm0, %v747_v22 }
 0x39a   :  { %v602_v17 = vpop.f32.mrf.mxu2  ;;  %v716_v37 = vpop.f32.mrf.mxu3 }
 0x39b   :  { %v627_v2 = vmul.f32 %v602_v17, %v1051_v5  ;;  %v741_v52 = vmul.f32 %v716_v37, %v1051_v5 }
 0x39d   :  { %v635_v44 = vadd.f32 %v627_v2, %v619_v23 }
 0x39e   :  { %v734_v26 = vld [vmem:[#allocation2 + $0x8] sm:$0xff] }
 0x39f   :  { %643 = vst.msk [vmem:[#allocation2 + $0x10] sm:$0xff] %vm89_vm0, %v635_v44  ;;  %v748_v29 = vadd.f32 %v741_v52, %v734_v26 }
 0x3a0   :  { %v761_v60 = vld [vmem:[#allocation2] sm:$0xff] }
 0x3a1   :  { %755 = vst.msk [vmem:[#allocation2 + $0x8] sm:$0xff] %vm89_vm0, %v748_v29 }
 0x3a2   :  { %v604_v3 = vpop.f32.mrf.mxu2  ;;  %v719_v53 = vpop.f32.mrf.mxu3  ;;  %769 = vst.msk [vmem:[#allocation9] sm:$0xff] %vm89_vm0, %v761_v60 }
 0x3a3   :  { %v628_v32 = vmul.f32 %v604_v3, %v1053_v6  ;;  %v742_v35 = vmul.f32 %v719_v53, %v1053_v6 }
 0x3a5   :  { %v636_v24 = vadd.f32 %v628_v32, %v620_v34 }
 0x3a6   :  { %v735_v36 = vld [vmem:[#allocation2 + $0x10] sm:$0xff] }
 0x3a7   :  { %644 = vst.msk [vmem:[#allocation2 + $0x18] sm:$0xff] %vm89_vm0, %v636_v24  ;;  %v749_v5 = vadd.f32 %v742_v35, %v735_v36 }
 0x3a8   :  { %v762_v20 = vld [vmem:[#allocation2 + $0x8] sm:$0xff] }
 0x3a9   :  { %756 = vst.msk [vmem:[#allocation2 + $0x10] sm:$0xff] %vm89_vm0, %v749_v5 }
 0x3aa   :  { %v607_v58 = vpop.f32.mrf.mxu2  ;;  %v721_v1 = vpop.f32.mrf.mxu3  ;;  %770 = vst.msk [vmem:[#allocation9 + $0x8] sm:$0xff] %vm89_vm0, %v762_v20 }
 0x3ab   :  { %v629_v59 = vmul.f32 %v607_v58, %v1058_v8  ;;  %v743_v38 = vmul.f32 %v721_v1, %v1058_v8 }
 0x3ad   :  { %v637_v4 = vadd.f32 %v629_v59, %v621_v21 }
 0x3ae   :  { %v736_v39 = vld [vmem:[#allocation2 + $0x18] sm:$0xff] }
 0x3af   :  { %645 = vst.msk [vmem:[#allocation2 + $0x20] sm:$0xff] %vm89_vm0, %v637_v4  ;;  %v750_v6 = vadd.f32 %v743_v38, %v736_v39 }
 0x3b0   :  { %v763_v18 = vld [vmem:[#allocation2 + $0x10] sm:$0xff] }
 0x3b1   :  { %757 = vst.msk [vmem:[#allocation2 + $0x18] sm:$0xff] %vm89_vm0, %v750_v6 }
 0x3b2   :  { %v609_v41 = vpop.f32.mrf.mxu2  ;;  %v724_v42 = vpop.f32.mrf.mxu3  ;;  %771 = vst.msk [vmem:[#allocation9 + $0x10] sm:$0xff] %vm89_vm0, %v763_v18 }
 0x3b3   :  { %v630_v15 = vmul.f32 %v609_v41, %v1060_v9  ;;  %v744_v27 = vmul.f32 %v724_v42, %v1060_v9 }
 0x3b5   :  { %v638_v19 = vadd.f32 %v630_v15, %v622_v30 }
 0x3b6   :  { %v737_v54 = vld [vmem:[#allocation2 + $0x20] sm:$0xff] }
 0x3b7   :  { %646 = vst.msk [vmem:[#allocation2 + $0x28] sm:$0xff] %vm89_vm0, %v638_v19  ;;  %v751_v8 = vadd.f32 %v744_v27, %v737_v54 }
 0x3b8   :  { %v764_v45 = vld [vmem:[#allocation2 + $0x18] sm:$0xff] }
 0x3b9   :  { %758 = vst.msk [vmem:[#allocation2 + $0x20] sm:$0xff] %vm89_vm0, %v751_v8 }
 0x3ba   :  { %v726_v46 = vpop.f32.mrf.mxu3  ;;  %772 = vst.msk [vmem:[#allocation9 + $0x18] sm:$0xff] %vm89_vm0, %v764_v45 }
 0x3bb   :  { %v745_v16 = vmul.f32 %v726_v46, %v1065_v11 }
 0x3be   :  { %v738_v10 = vld [vmem:[#allocation2 + $0x28] sm:$0xff] }
 0x3bf   :  { %v752_v33 = vadd.f32 %v745_v16, %v738_v10 }
 0x3c0   :  { %v765_v47 = vld [vmem:[#allocation2 + $0x20] sm:$0xff] }
 0x3c1   :  { %759 = vst.msk [vmem:[#allocation2 + $0x28] sm:$0xff] %vm89_vm0, %v752_v33 }
 0x3c2   :  { %773 = vst.msk [vmem:[#allocation9 + $0x20] sm:$0xff] %vm89_vm0, %v765_v47 }
 0x3c8   :  { %v766_v9 = vld [vmem:[#allocation2 + $0x28] sm:$0xff] }
 0x3c9   :  { %774 = vst.msk [vmem:[#allocation9 + $0x28] sm:$0xff] %vm89_vm0, %v766_v9 }
 0x3e2   :  { %v612_v48 = vpop.f32.mrf.mxu2 }
 0x3e3   :  { %v631_v50 = vmul.f32 %v612_v48, %v1065_v11 }
 0x3e5   :  { %v639_v14 = vadd.f32 %v631_v50, %v623_v51 }
 0x3e7   :  { %647 = vst.msk [vmem:[#allocation2 + $0x30] sm:$0xff] %vm89_vm0, %v639_v14 }
 0x3ea   :  { %v614_v28 = vpop.f32.mrf.mxu2  ;;  %v729_v25 = vpop.f32.mrf.mxu3 }
 0x3eb   :  { %v632_v55 = vmul.f32 %v614_v28, %v1067_v12  ;;  %v746_v57 = vmul.f32 %v729_v25, %v1067_v12 }
 0x3ed   :  { %v640_v49 = vadd.f32 %v632_v55, %v624_v56 }
 0x3ee   :  { %v739_v31 = vld [vmem:[#allocation2 + $0x30] sm:$0xff] }
 0x3ef   :  { %648 = vst.msk [vmem:[#allocation2 + $0x38] sm:$0xff] %vm89_vm0, %v640_v49  ;;  %v753_v61 = vadd.f32 %v746_v57, %v739_v31 }
 0x3f1   :  { %760 = vst.msk [vmem:[#allocation2 + $0x30] sm:$0xff] %vm89_vm0, %v753_v61 }
 0x3f2   :  { %v731_v62 = vpop.f32.mrf.mxu3 }
 0x3f6   :  { %v768_v11 = vld [vmem:[#allocation2 + $0x38] sm:$0xff] }
 0x3f7   :  { %776 = vst.msk [vmem:[#allocation9 + $0x38] sm:$0xff] %vm89_vm0, %v768_v11 }
 0x3f8   :  { %v767_v63 = vld [vmem:[#allocation2 + $0x30] sm:$0xff] }
 0x3f9   :  { %775 = vst.msk [vmem:[#allocation9 + $0x30] sm:$0xff] %vm89_vm0, %v767_v63 }
 0x3fa   :  { %789 = dma.vmem_to_hbm [thread:$0]  %s782_s4, 1024, %s784_s7, [#allocation5], %s1004_s24, %s1004_s24, %s1005_s25  }
 0x3fb   :  { %998 = dma.done.wait [#allocation5], 1024  }
 0x3fc   :  { %999 = vsyncadd [#allocation5], 4294966272 }
 0x3fd   :  { %794 = vsyncpa [#allocation4], 1 }
 0x3fe   :  { %795 = vsyncpa [#allocation7], 1 }
 0x3ff   :  { %796 = vsyncpa [#allocation5], 1 }

</bundles_post_ra>
